<compile_context>
chip_gen: v7x
topology: tpu7x:2x2x1
jax: 0.10.0
libtpu: 0.0.40
codegen_flags: <defaults>
</compile_context>

<pallas_src>
import functools

import jax
import jax.numpy as jnp
from jax.experimental import pallas as pl
from jax.experimental.pallas import tpu as pltpu


def _bn_seq_kernel(x_ref, w_ref, b_ref, rm_ref, rv_ref,
                   y_ref, new_rm_ref, new_rv_ref,
                   *, eps, momentum, bessel, inv_b):
    """One grid step = Tb timesteps: per-(t, feature) batch stats + affine + EMA."""
    x = x_ref[...].astype(jnp.float32)                      # (Tb, B, F)

    # One-pass reduction over the batch (sublane) axis; both sums go to the XLU.
    s = jnp.sum(x, axis=1, keepdims=True)                   # (Tb, 1, F)
    ss = jnp.sum(x * x, axis=1, keepdims=True)              # (Tb, 1, F)
    mean = s * inv_b
    # E[x^2] - mean^2 can cancel slightly negative in f32 -> clamp before rsqrt.
    var = jnp.maximum(ss * inv_b - mean * mean, 0.0)        # biased variance

    inv_std = jax.lax.rsqrt(var + eps)                      # EUP slot (cheap)

    # Fold normalization + affine into one scale/shift per (t, feature).
    scale = inv_std * w_ref[...]                            # (Tb, 1, F)
    shift = b_ref[...] - mean * scale                       # (Tb, 1, F)
    y_ref[...] = (x * scale + shift).astype(y_ref.dtype)    # 2 VPU ops / element

    # Fused running-buffer EMA update (PyTorch uses the *unbiased* variance).
    new_rm_ref[...] = (1.0 - momentum) * rm_ref[...] + momentum * mean
    new_rv_ref[...] = (1.0 - momentum) * rv_ref[...] + momentum * (var * bessel)


def _choose_tb(T, B, F, itemsize, *, block_bytes_target=1 << 20,
               min_split_bytes=256 << 10):
    """Pick timesteps-per-block: ~1 MiB blocks, >=2 grid steps when worthwhile."""
    per_t = max(1, B * F * itemsize)
    tb = max(1, min(T, block_bytes_target // per_t))
    # v7x has 2 TensorCores: keep at least 2 "parallel" grid steps when each
    # half-sequence block still moves enough bytes to amortize per-step overhead.
    half = pl.cdiv(T, 2)
    if tb > half and half * per_t >= min_split_bytes:
        tb = half
    return tb


def bn_sequence_forward(x_seq, weight, bias, running_means, running_vars,
                        *, eps=1e-5, momentum=0.1, block_timesteps=None):
    """Apply BatchNormModule.forward (training mode) to every timestep at once.

    Args:
      x_seq:          [T, B, F] inputs (one batch per timestep).
      weight, bias:   [F] affine parameters (shared across timesteps).
      running_means:  [T, F] per-timestep running-mean buffers.
      running_vars:   [T, F] per-timestep running-var buffers.

    Returns:
      (y_seq [T, B, F], new_running_means [T, F], new_running_vars [T, F])
    """
    T, B, F = x_seq.shape
    assert weight.shape == (F,) and bias.shape == (F,)
    assert running_means.shape == (T, F) and running_vars.shape == (T, F)

    # Tiny params only: reshape/astype (bitcast-level work, no big-tensor pads).
    w2 = weight.astype(jnp.float32).reshape(1, F)
    b2 = bias.astype(jnp.float32).reshape(1, F)
    rm3 = running_means.astype(jnp.float32).reshape(T, 1, F)   # contiguous view
    rv3 = running_vars.astype(jnp.float32).reshape(T, 1, F)

    # TODO(synk): PyTorch yields inf/nan for the unbiased variance when B == 1;
    # here we clamp the Bessel factor to 1 instead.
    bessel = float(B) / float(B - 1) if B > 1 else 1.0

    tb = block_timesteps if block_timesteps is not None else _choose_tb(
        T, B, F, jnp.dtype(x_seq.dtype).itemsize)
    tb = max(1, min(int(tb), T))
    grid = (pl.cdiv(T, tb),)          # ragged tail handled by boundary masking

    kernel = functools.partial(_bn_seq_kernel, eps=float(eps),
                               momentum=float(momentum), bessel=bessel,
                               inv_b=1.0 / float(B))

    y, new_rm, new_rv = pl.pallas_call(
        kernel,
        out_shape=(
            jax.ShapeDtypeStruct((T, B, F), x_seq.dtype),
            jax.ShapeDtypeStruct((T, 1, F), jnp.float32),
            jax.ShapeDtypeStruct((T, 1, F), jnp.float32),
        ),
        grid=grid,
        in_specs=[
            pl.BlockSpec((tb, B, F), lambda t: (t, 0, 0)),     # x block
            pl.BlockSpec((1, F), lambda t: (0, 0)),            # weight (resident)
            pl.BlockSpec((1, F), lambda t: (0, 0)),            # bias   (resident)
            pl.BlockSpec((tb, 1, F), lambda t: (t, 0, 0)),     # running_mean blk
            pl.BlockSpec((tb, 1, F), lambda t: (t, 0, 0)),     # running_var blk
        ],
        out_specs=(
            pl.BlockSpec((tb, B, F), lambda t: (t, 0, 0)),     # y block
            pl.BlockSpec((tb, 1, F), lambda t: (t, 0, 0)),     # new running_mean
            pl.BlockSpec((tb, 1, F), lambda t: (t, 0, 0)),     # new running_var
        ),
        # Update the running buffers in place (no extra HBM round trip).
        input_output_aliases={3: 1, 4: 2},
        compiler_params=pltpu.CompilerParams(
            dimension_semantics=("parallel",)),
    )(x_seq, w2, b2, rm3, rv3)

    return y, new_rm.reshape(T, F), new_rv.reshape(T, F)


def batch_norm_module_forward(x, time, weight, bias, running_means, running_vars,
                              *, eps=1e-5, momentum=0.1):
    """Functional single-timestep equivalent of BatchNormModule.forward.

    `time` may be a Python int or a traced int32 scalar (jit-friendly).
    """
    T = running_means.shape[0]
    t = jnp.minimum(jnp.asarray(time, jnp.int32), T - 1)    # time clamp as in forward()
    rm_t = jax.lax.dynamic_slice_in_dim(running_means, t, 1, axis=0)   # (1, F)
    rv_t = jax.lax.dynamic_slice_in_dim(running_vars, t, 1, axis=0)    # (1, F)
    y, new_rm_t, new_rv_t = bn_sequence_forward(
        x[None], weight, bias, rm_t, rv_t, eps=eps, momentum=momentum)
    new_rms = jax.lax.dynamic_update_slice_in_dim(
        running_means, new_rm_t.astype(running_means.dtype), t, axis=0)
    new_rvs = jax.lax.dynamic_update_slice_in_dim(
        running_vars, new_rv_t.astype(running_vars.dtype), t, axis=0)
    return y[0], new_rms, new_rvs


def _bn_reference(x, w, b, rm, rv, eps, momentum):
    """Pure-JAX reference of F.batch_norm(training=True) for one timestep."""
    mean = x.mean(axis=0)
    var = x.var(axis=0)                                     # biased
    y = (x - mean) / jnp.sqrt(var + eps) * w + b
    n = x.shape[0]
    unbiased = var * n / max(n - 1, 1)
    return (y,
            (1.0 - momentum) * rm + momentum * mean,
            (1.0 - momentum) * rv + momentum * unbiased)


if __name__ == "__main__":
    # Module hyperparameters (mirrors BatchNormModule.__init__).
    num_features = 32
    max_length = 8
    batch_size = 8
    eps = 1e-5
    momentum = 0.1

    key = jax.random.PRNGKey(0)
    kx, kw = jax.random.split(key)

    # weight ~ U[0,1) (torch .uniform_()), bias = 0 (zero_bias=True).
    weight = jax.random.uniform(kw, (num_features,), dtype=jnp.float32)
    bias = jnp.zeros((num_features,), dtype=jnp.float32)

    # Running buffers: mean=0, var=1 for every timestep (reset_parameters).
    running_means = jnp.zeros((max_length, num_features), dtype=jnp.float32)
    running_vars = jnp.ones((max_length, num_features), dtype=jnp.float32)

    # Inputs for the whole sequence: [T, batch_size, num_features].
    x_seq = jax.random.normal(kx, (max_length, batch_size, num_features),
                              dtype=jnp.float32)

    # --- batched path: all timesteps in one pallas_call -------------------
    y_seq, new_rms, new_rvs = bn_sequence_forward(
        x_seq, weight, bias, running_means, running_vars,
        eps=eps, momentum=momentum)
    jax.block_until_ready((y_seq, new_rms, new_rvs))

    for t in range(max_length):
        y_ref, rm_ref, rv_ref = _bn_reference(
            x_seq[t], weight, bias, running_means[t], running_vars[t],
            eps, momentum)
        assert jnp.allclose(y_seq[t], y_ref, atol=1e-4, rtol=1e-4), f"y mismatch t={t}"
        assert jnp.allclose(new_rms[t], rm_ref, atol=1e-5, rtol=1e-5), f"rm mismatch t={t}"
        assert jnp.allclose(new_rvs[t], rv_ref, atol=1e-4, rtol=1e-4), f"rv mismatch t={t}"

    # --- multi-block (Tb=2 -> grid=4) and ragged-tail (Tb=3 -> grid=3) paths
    for tb_force in (2, 3):
        y_f, rm_f, rv_f = bn_sequence_forward(
            x_seq, weight, bias, running_means, running_vars,
            eps=eps, momentum=momentum, block_timesteps=tb_force)
        jax.block_until_ready((y_f, rm_f, rv_f))
        assert jnp.allclose(y_f, y_seq, atol=1e-5, rtol=1e-5), f"y mismatch tb={tb_force}"
        assert jnp.allclose(rm_f, new_rms, atol=1e-6, rtol=1e-6), f"rm mismatch tb={tb_force}"
        assert jnp.allclose(rv_f, new_rvs, atol=1e-6, rtol=1e-6), f"rv mismatch tb={tb_force}"

    # --- single-timestep path (exact module-forward signature), jitted ----
    t_single = 3
    single_fn = jax.jit(functools.partial(batch_norm_module_forward,
                                          eps=eps, momentum=momentum))
    y1, rms1, rvs1 = single_fn(x_seq[t_single], jnp.int32(t_single),
                               weight, bias, running_means, running_vars)
    jax.block_until_ready((y1, rms1, rvs1))

    y_ref, rm_ref, rv_ref = _bn_reference(
        x_seq[t_single], weight, bias, running_means[t_single],
        running_vars[t_single], eps, momentum)
    assert jnp.allclose(y1, y_ref, atol=1e-4, rtol=1e-4)
    assert jnp.allclose(rms1[t_single], rm_ref, atol=1e-5, rtol=1e-5)
    assert jnp.allclose(rvs1[t_single], rv_ref, atol=1e-4, rtol=1e-4)
    # Untouched timesteps stay untouched.
    assert jnp.allclose(rms1[0], running_means[0])
    assert jnp.allclose(rvs1[0], running_vars[0])

    print("KERNEL_OK")
</pallas_src>

<mosaic_0001>
module attributes {stable_mosaic.version = 11 : i64} {
  func.func @_bn_seq_kernel(%arg0: i32, %arg1: memref<8x8x32xf32, #tpu.memory_space<vmem>>, %arg2: memref<1x32xf32, #tpu.memory_space<vmem>>, %arg3: memref<1x32xf32, #tpu.memory_space<vmem>>, %arg4: memref<8x1x32xf32, #tpu.memory_space<vmem>>, %arg5: memref<8x1x32xf32, #tpu.memory_space<vmem>>, %arg6: memref<8x8x32xf32, #tpu.memory_space<vmem>>, %arg7: memref<8x1x32xf32, #tpu.memory_space<vmem>>, %arg8: memref<8x1x32xf32, #tpu.memory_space<vmem>>) attributes {dimension_semantics = [#tpu.dimension_semantics<parallel>], iteration_bounds = array<i64: 1>, scalar_prefetch = 0 : i64, scratch_operands = 0 : i64, tpu.core_type = #tpu.core_type<tc>, window_params = [{transform_indices = @transform_0, window_bounds = array<i64: 8, 8, 32>}, {pipeline_mode = #tpu.pipeline_mode<synchronous>, transform_indices = @transform_1, window_bounds = array<i64: 1, 32>}, {pipeline_mode = #tpu.pipeline_mode<synchronous>, transform_indices = @transform_2, window_bounds = array<i64: 1, 32>}, {transform_indices = @transform_3, window_bounds = array<i64: 8, 1, 32>}, {transform_indices = @transform_4, window_bounds = array<i64: 8, 1, 32>}, {transform_indices = @transform_5, window_bounds = array<i64: 8, 8, 32>}, {transform_indices = @transform_6, window_bounds = array<i64: 8, 1, 32>}, {transform_indices = @transform_7, window_bounds = array<i64: 8, 1, 32>}]} {
    %c0 = arith.constant 0 : index
    %c0_0 = arith.constant 0 : index
    %c0_1 = arith.constant 0 : index
    %0 = vector.load %arg1[%c0, %c0_0, %c0_1] : memref<8x8x32xf32, #tpu.memory_space<vmem>>, vector<8x8x32xf32>
    %cst = arith.constant dense<0.000000e+00> : vector<8x32xf32>
    %1 = vector.multi_reduction <add>, %0, %cst [1] : vector<8x8x32xf32> to vector<8x32xf32>
    %2 = vector.shape_cast %1 : vector<8x32xf32> to vector<8x1x32xf32>
    %3 = arith.mulf %0, %0 : vector<8x8x32xf32>
    %cst_2 = arith.constant dense<0.000000e+00> : vector<8x32xf32>
    %4 = vector.multi_reduction <add>, %3, %cst_2 [1] : vector<8x8x32xf32> to vector<8x32xf32>
    %5 = vector.shape_cast %4 : vector<8x32xf32> to vector<8x1x32xf32>
    %cst_3 = arith.constant 1.250000e-01 : f32
    %6 = vector.broadcast %cst_3 : f32 to vector<8x1x32xf32>
    %7 = arith.mulf %2, %6 : vector<8x1x32xf32>
    %cst_4 = arith.constant 1.250000e-01 : f32
    %8 = vector.broadcast %cst_4 : f32 to vector<8x1x32xf32>
    %9 = arith.mulf %5, %8 : vector<8x1x32xf32>
    %10 = arith.mulf %7, %7 : vector<8x1x32xf32>
    %11 = arith.subf %9, %10 : vector<8x1x32xf32>
    %cst_5 = arith.constant 0.000000e+00 : f32
    %12 = vector.broadcast %cst_5 : f32 to vector<8x1x32xf32>
    %13 = arith.maximumf %11, %12 : vector<8x1x32xf32>
    %cst_6 = arith.constant 9.99999974E-6 : f32
    %14 = vector.broadcast %cst_6 : f32 to vector<8x1x32xf32>
    %15 = arith.addf %13, %14 : vector<8x1x32xf32>
    %16 = math.rsqrt %15 : vector<8x1x32xf32>
    %c0_7 = arith.constant 0 : index
    %c0_8 = arith.constant 0 : index
    %17 = vector.load %arg2[%c0_7, %c0_8] : memref<1x32xf32, #tpu.memory_space<vmem>>, vector<1x32xf32>
    %18 = vector.shape_cast %17 : vector<1x32xf32> to vector<1x1x32xf32>
    %19 = vector.broadcast %18 : vector<1x1x32xf32> to vector<8x1x32xf32>
    %20 = arith.mulf %16, %19 : vector<8x1x32xf32>
    %c0_9 = arith.constant 0 : index
    %c0_10 = arith.constant 0 : index
    %21 = vector.load %arg3[%c0_9, %c0_10] : memref<1x32xf32, #tpu.memory_space<vmem>>, vector<1x32xf32>
    %22 = arith.mulf %7, %20 : vector<8x1x32xf32>
    %23 = vector.shape_cast %21 : vector<1x32xf32> to vector<1x1x32xf32>
    %24 = vector.broadcast %23 : vector<1x1x32xf32> to vector<8x1x32xf32>
    %25 = arith.subf %24, %22 : vector<8x1x32xf32>
    %26 = vector.broadcast %20 : vector<8x1x32xf32> to vector<8x8x32xf32>
    %27 = arith.mulf %0, %26 : vector<8x8x32xf32>
    %28 = vector.broadcast %25 : vector<8x1x32xf32> to vector<8x8x32xf32>
    %29 = arith.addf %27, %28 : vector<8x8x32xf32>
    %c0_11 = arith.constant 0 : index
    %c0_12 = arith.constant 0 : index
    %c0_13 = arith.constant 0 : index
    %30 = vector.load %arg6[%c0_11, %c0_12, %c0_13] : memref<8x8x32xf32, #tpu.memory_space<vmem>>, vector<8x8x32xf32>
    tpu.vector_store %arg6[%c0_11, %c0_12, %c0_13], %29 {strides = array<i32>} : memref<8x8x32xf32, #tpu.memory_space<vmem>>, vector<8x8x32xf32>,
    %c0_14 = arith.constant 0 : index
    %c0_15 = arith.constant 0 : index
    %c0_16 = arith.constant 0 : index
    %31 = vector.load %arg4[%c0_14, %c0_15, %c0_16] : memref<8x1x32xf32, #tpu.memory_space<vmem>>, vector<8x1x32xf32>
    %cst_17 = arith.constant 0.899999976 : f32
    %32 = vector.broadcast %cst_17 : f32 to vector<8x1x32xf32>
    %33 = arith.mulf %32, %31 : vector<8x1x32xf32>
    %cst_18 = arith.constant 1.000000e-01 : f32
    %34 = vector.broadcast %cst_18 : f32 to vector<8x1x32xf32>
    %35 = arith.mulf %34, %7 : vector<8x1x32xf32>
    %36 = arith.addf %33, %35 : vector<8x1x32xf32>
    %c0_19 = arith.constant 0 : index
    %c0_20 = arith.constant 0 : index
    %c0_21 = arith.constant 0 : index
    %37 = vector.load %arg7[%c0_19, %c0_20, %c0_21] : memref<8x1x32xf32, #tpu.memory_space<vmem>>, vector<8x1x32xf32>
    tpu.vector_store %arg7[%c0_19, %c0_20, %c0_21], %36 {strides = array<i32>} : memref<8x1x32xf32, #tpu.memory_space<vmem>>, vector<8x1x32xf32>,
    %c0_22 = arith.constant 0 : index
    %c0_23 = arith.constant 0 : index
    %c0_24 = arith.constant 0 : index
    %38 = vector.load %arg5[%c0_22, %c0_23, %c0_24] : memref<8x1x32xf32, #tpu.memory_space<vmem>>, vector<8x1x32xf32>
    %cst_25 = arith.constant 0.899999976 : f32
    %39 = vector.broadcast %cst_25 : f32 to vector<8x1x32xf32>
    %40 = arith.mulf %39, %38 : vector<8x1x32xf32>
    %cst_26 = arith.constant 1.14285719 : f32
    %41 = vector.broadcast %cst_26 : f32 to vector<8x1x32xf32>
    %42 = arith.mulf %13, %41 : vector<8x1x32xf32>
    %cst_27 = arith.constant 1.000000e-01 : f32
    %43 = vector.broadcast %cst_27 : f32 to vector<8x1x32xf32>
    %44 = arith.mulf %43, %42 : vector<8x1x32xf32>
    %45 = arith.addf %40, %44 : vector<8x1x32xf32>
    %c0_28 = arith.constant 0 : index
    %c0_29 = arith.constant 0 : index
    %c0_30 = arith.constant 0 : index
    %46 = vector.load %arg8[%c0_28, %c0_29, %c0_30] : memref<8x1x32xf32, #tpu.memory_space<vmem>>, vector<8x1x32xf32>
    tpu.vector_store %arg8[%c0_28, %c0_29, %c0_30], %45 {strides = array<i32>} : memref<8x1x32xf32, #tpu.memory_space<vmem>>, vector<8x1x32xf32>,
    return
  }
  func.func @transform_0(%arg0: i32) -> (i32, i32, i32) {
    %c0_i32 = arith.constant 0 : i32
    %c0_i32_0 = arith.constant 0 : i32
    %c0_i32_1 = arith.constant 0 : i32
    return %arg0, %c0_i32, %c0_i32_0 : i32, i32, i32
  }
  func.func @transform_1(%arg0: i32) -> (i32, i32) {
    %c0_i32 = arith.constant 0 : i32
    %c0_i32_0 = arith.constant 0 : i32
    %c0_i32_1 = arith.constant 0 : i32
    return %c0_i32, %c0_i32_0 : i32, i32
  }
  func.func @transform_2(%arg0: i32) -> (i32, i32) {
    %c0_i32 = arith.constant 0 : i32
    %c0_i32_0 = arith.constant 0 : i32
    %c0_i32_1 = arith.constant 0 : i32
    return %c0_i32, %c0_i32_0 : i32, i32
  }
  func.func @transform_3(%arg0: i32) -> (i32, i32, i32) {
    %c0_i32 = arith.constant 0 : i32
    %c0_i32_0 = arith.constant 0 : i32
    %c0_i32_1 = arith.constant 0 : i32
    return %arg0, %c0_i32, %c0_i32_0 : i32, i32, i32
  }
  func.func @transform_4(%arg0: i32) -> (i32, i32, i32) {
    %c0_i32 = arith.constant 0 : i32
    %c0_i32_0 = arith.constant 0 : i32
    %c0_i32_1 = arith.constant 0 : i32
    return %arg0, %c0_i32, %c0_i32_0 : i32, i32, i32
  }
  func.func @transform_5(%arg0: i32) -> (i32, i32, i32) {
    %c0_i32 = arith.constant 0 : i32
    %c0_i32_0 = arith.constant 0 : i32
    %c0_i32_1 = arith.constant 0 : i32
    return %arg0, %c0_i32, %c0_i32_0 : i32, i32, i32
  }
  func.func @transform_6(%arg0: i32) -> (i32, i32, i32) {
    %c0_i32 = arith.constant 0 : i32
    %c0_i32_0 = arith.constant 0 : i32
    %c0_i32_1 = arith.constant 0 : i32
    return %arg0, %c0_i32, %c0_i32_0 : i32, i32, i32
  }
  func.func @transform_7(%arg0: i32) -> (i32, i32, i32) {
    %c0_i32 = arith.constant 0 : i32
    %c0_i32_0 = arith.constant 0 : i32
    %c0_i32_1 = arith.constant 0 : i32
    return %arg0, %c0_i32, %c0_i32_0 : i32, i32, i32
  }
}

</mosaic_0001>

<bundles_post_ra>
// kernel: tpu_custom_call.1
= control target key start
LH: loop header
LB: loop body
LE: loop exit
PB: predicated region body
PF: predicated region fallthrough
CT: control target
= control target key end

     0   :  { %13 = vsyncpa [#allocation3], 0  ;;  %s1065_s0 = inlined_call_operand.hbm [shape: f32[8,8,32], index: 0, kind: input, shape index: {}]   ;;  %s1066_s1 = inlined_call_operand.vmem [shape: f32[1,32], index: 1, kind: input, shape index: {}]   ;;  %s1067_s2 = inlined_call_operand.vmem [shape: f32[1,32], index: 2, kind: input, shape index: {}]   ;;  %s1068_s3 = inlined_call_operand.hbm [shape: f32[8,1,32], index: 3, kind: input, shape index: {}, may-alias: {3,6}]   ;;  %s1069_s4 = inlined_call_operand.hbm [shape: f32[8,1,32], index: 4, kind: input, shape index: {}, may-alias: {4,7}]   ;;  %s1070_s5 = inlined_call_operand.hbm [shape: f32[8,8,32], index: 5, kind: output, shape index: {0}]   ;;  %s1071_s6 = inlined_call_operand.hbm [shape: f32[8,1,32], index: 6, kind: output, shape index: {1}, may-alias: {3,6}]   ;;  %s1072_s7 = inlined_call_operand.hbm [shape: f32[8,1,32], index: 7, kind: output, shape index: {2}, may-alias: {4,7}]  }
   0x1   :  { %14 = vsyncpa [#allocation6], 0 }
   0x2   :  { %15 = vsyncpa [#allocation4], 0 }
   0x3   :  { %16 = vsyncpa [#allocation10], 0  ;;  %s685_s24 = smov [#allocation5]   ;;  %s545_s28 = scalar_lea.hbm %s1068_s3, 128 }
   0x4   :  { %s38_s25 = sshll.u32 %s685_s24, 4  ;;  %p546_p0 = scmp.ne.s32.totalorder %s1068_s3, %s545_s28  ;;  %s39_s25 = int_to_ptr.vmem [resolvable:$true] %s38_s25 }
   0x5   :  { %p549_p1 = scmp.lt.u32.totalorder %s545_s28, %s1068_s3 }
   0x7   :  { %p551_p2 = pnand %p549_p1, %p546_p0 }
   0x9   :  { %554 = shalt.err (!%p551_p2)
}
   0xa   :  { %s555_s10 = scalar_lea.vmem %s39_s25, 128  ;;  %p560_p4 = scmp.lt.s32.totalorder %s39_s25, %s39_s25 }
   0xb   :  { %p556_p3 = scmp.ne.s32.totalorder %s39_s25, %s555_s10  ;;  %p561_p5 = scmp.lt.s32.totalorder %s555_s10, %s555_s10 }
   0xd   :  { %p562_p6 = por %p561_p5, %p560_p4 }
   0xf   :  { %p563_p7 = pnand %p562_p6, %p556_p3 }
  0x11   :  { %566 = shalt.err (!%p563_p7)
}
  0x12   :  { %s686_s11 = smov 16   ;;  %s687_s12 = smov 1  }
  0x13   :  { %44 = dma.hbm_to_vmem [thread:$0]  %s1068_s3, 128, %s39_s25, [#allocation6], %s686_s11, %s686_s11, %s687_s12  }
  0x14   :  { %s688_s15 = smov [#allocation2]   ;;  %s567_s19 = scalar_lea.hbm %s1065_s0, 1024 }
  0x15   :  { %s22_s16 = sshll.u32 %s688_s15, 4  ;;  %p568_p8 = scmp.ne.s32.totalorder %s1065_s0, %s567_s19  ;;  %s23_s16 = int_to_ptr.vmem [resolvable:$true] %s22_s16 }
  0x16   :  { %p571_p9 = scmp.lt.u32.totalorder %s567_s19, %s1065_s0 }
  0x18   :  { %p573_p10 = pnand %p571_p9, %p568_p8 }
  0x1a   :  { %576 = shalt.err (!%p573_p10)
}
  0x1b   :  { %s577_s24 = scalar_lea.vmem %s23_s16, 1024  ;;  %p582_p12 = scmp.lt.s32.totalorder %s23_s16, %s23_s16 }
  0x1c   :  { %p578_p11 = scmp.ne.s32.totalorder %s23_s16, %s577_s24  ;;  %p583_p13 = scmp.lt.s32.totalorder %s577_s24, %s577_s24 }
  0x1e   :  { %p584_p0 = por %p583_p13, %p582_p12 }
  0x20   :  { %p585_p1 = pnand %p584_p0, %p578_p11 }
  0x22   :  { %588 = shalt.err (!%p585_p1)
}
  0x23   :  { %s689_s3 = smov 128   ;;  %s690_s25 = smov 8  }
  0x24   :  { %28 = dma.hbm_to_vmem [thread:$0]  %s1065_s0, 1024, %s23_s16, [#allocation3], %s689_s3, %s689_s3, %s690_s25  }
  0x25   :  { %s691_s28 = smov [#allocation7]   ;;  %s589_s9 = scalar_lea.hbm %s1069_s4, 128 }
  0x26   :  { %s50_s29 = sshll.u32 %s691_s28, 4  ;;  %p590_p2 = scmp.ne.s32.totalorder %s1069_s4, %s589_s9  ;;  %s51_s29 = int_to_ptr.vmem [resolvable:$true] %s50_s29 }
  0x27   :  { %p593_p3 = scmp.lt.u32.totalorder %s589_s9, %s1069_s4 }
  0x29   :  { %p595_p4 = pnand %p593_p3, %p590_p2 }
  0x2b   :  { %598 = shalt.err (!%p595_p4)
}
  0x2c   :  { %s599_s17 = scalar_lea.vmem %s51_s29, 128  ;;  %p604_p6 = scmp.lt.s32.totalorder %s51_s29, %s51_s29 }
  0x2d   :  { %p600_p5 = scmp.ne.s32.totalorder %s51_s29, %s599_s17  ;;  %p605_p7 = scmp.lt.s32.totalorder %s599_s17, %s599_s17 }
  0x2f   :  { %p606_p8 = por %p605_p7, %p604_p6 }
  0x31   :  { %p607_p9 = pnand %p606_p8, %p600_p5 }
  0x33   :  { %610 = shalt.err (!%p607_p9)
}
  0x34   :  { %56 = dma.hbm_to_vmem [thread:$0]  %s1069_s4, 128, %s51_s29, [#allocation6], %s686_s11, %s686_s11, %s687_s12  }
  0x35   :  { %677 = dma.done.wait [#allocation3], 1024  }
  0x36   :  { %678 = vsyncadd [#allocation3], 4294966272 }
  0x37   :  { %679 = dma.done.wait [#allocation6], 256  }
  0x38   :  { %680 = vsyncadd [#allocation6], 4294967040  ;;  %v277_v0 = vlaneseq  ;;  %vm74_vm0 = vcmask 261120   ;;  %v780_v2 = vld [vmem:[#allocation2] sm:$0xff]  ;;  %v782_v4 = vld [vmem:[#allocation2 + $0x8] sm:$0xff]  ;;  %vm413_vm1 = vcmask 253952  }
  0x39   :  { %v381_v3 = vld [vmem:[#allocation5] sm:$0x1]  ;;  %v75_v6 = vsel %vm74_vm0, %v780_v2, 0.0  ;;  %v131_v7 = vmul.f32 %v780_v2, %v780_v2  ;;  %v82_v9 = vsel %vm74_vm0, %v782_v4, 0.0  ;;  %v382_v10 = vld [vmem:[#allocation5 + $0x1] sm:$0x1]  ;;  %v132_v13 = vmul.f32 %v782_v4, %v782_v4 }
  0x3a   :  { %v278_v1 = vshrl.u32 %v277_v0, 7  ;;  %v790_v8 = vmul.f32 0.9, %v381_v3  ;;  %v76_v11 = vrot.slane %v75_v6, 4  ;;  %v83_v12 = vrot.slane %v82_v9, 4  ;;  %v798_v15 = vld [vmem:[#allocation2 + $0x10] sm:$0xff] }
  0x3b   :  { %v796_v14 = vmul.f32 0.9, %v382_v10  ;;  %v800_v16 = vld [vmem:[#allocation2 + $0x18] sm:$0xff]  ;;  %v139_v17 = vsel %vm74_vm0, %v131_v7, 0.0  ;;  %v89_v18 = vsel %vm74_vm0, %v798_v15, 0.0  ;;  %v133_v19 = vmul.f32 %v798_v15, %v798_v15  ;;  %s692_s20 = smov [#allocation9]  }
  0x3c   :  { %v784_v5 = vsub.s32 0, %v278_v1  ;;  %v383_v20 = vld [vmem:[#allocation5 + $0x2] sm:$0x1]  ;;  %v96_v21 = vsel %vm74_vm0, %v800_v16, 0.0  ;;  %v77_v22 = vadd.f32 %v76_v11, %v75_v6  ;;  %v140_v23 = vrot.slane %v139_v17, 4 }
  0x3d   :  { %v84_v24 = vadd.f32 %v83_v12, %v82_v9  ;;  %v146_v25 = vsel %vm74_vm0, %v132_v13, 0.0  ;;  %v90_v27 = vrot.slane %v89_v18, 4  ;;  %v153_v28 = vsel %vm74_vm0, %v133_v19, 0.0 }
  0x3e   :  { %v147_v26 = vrot.slane %v146_v25, 4  ;;  %v811_v29 = vmul.f32 0.9, %v383_v20  ;;  %v78_v30 = vrot.slane %v77_v22, 2  ;;  %v141_v31 = vadd.f32 %v140_v23, %v139_v17 }
  0x3f   :  { %v85_v32 = vrot.slane %v84_v24, 2  ;;  %v154_v33 = vrot.slane %v153_v28, 4  ;;  %v91_v35 = vadd.f32 %v90_v27, %v89_v18  ;;  %v97_v36 = vrot.slane %v96_v21, 4 }
  0x40   :  { %v148_v34 = vadd.f32 %v147_v26, %v146_v25  ;;  %v134_v37 = vmul.f32 %v800_v16, %v800_v16  ;;  %v79_v38 = vadd.f32 %v78_v30, %v77_v22  ;;  %v142_v39 = vrot.slane %v141_v31, 2  ;;  %v384_v25 = vld [vmem:[#allocation5 + $0x3] sm:$0x1] }
  0x41   :  { %v86_v40 = vadd.f32 %v85_v32, %v84_v24  ;;  %v155_v41 = vadd.f32 %v154_v33, %v153_v28  ;;  %v92_v43 = vrot.slane %v91_v35, 2  ;;  %v98_v44 = vadd.f32 %v97_v36, %v96_v21  ;;  %v829_v26 = vld [vmem:[#allocation2 + $0x20] sm:$0xff] }
  0x42   :  { %v149_v42 = vrot.slane %v148_v34, 2  ;;  %v160_v45 = vsel %vm74_vm0, %v134_v37, 0.0  ;;  %v80_v46 = vrot.slane %v79_v38, 1  ;;  %v143_v47 = vadd.f32 %v142_v39, %v141_v31 }
  0x43   :  { %v87_v48 = vrot.slane %v86_v40, 1  ;;  %v156_v49 = vrot.slane %v155_v41, 2  ;;  %v93_v51 = vadd.f32 %v92_v43, %v91_v35  ;;  %v99_v52 = vrot.slane %v98_v44, 2  ;;  %v849_v43 = vld [vmem:[#allocation2 + $0x28] sm:$0xff] }
  0x44   :  { %v150_v50 = vadd.f32 %v149_v42, %v148_v34  ;;  %v161_v53 = vrot.slane %v160_v45, 4  ;;  %v81_v54 = vadd.f32 %v80_v46, %v79_v38  ;;  %v144_v55 = vrot.slane %v143_v47, 1  ;;  %v385_v38 = vld [vmem:[#allocation5 + $0x4] sm:$0x1] }
  0x45   :  { %v88_v56 = vadd.f32 %v87_v48, %v86_v40  ;;  %v157_v57 = vadd.f32 %v156_v49, %v155_v41  ;;  %v94_v59 = vrot.slane %v93_v51, 1  ;;  %v100_v60 = vadd.f32 %v99_v52, %v98_v44 }
  0x46   :  { %v151_v58 = vrot.slane %v150_v50, 1  ;;  %v162_v61 = vadd.f32 %v161_v53, %v160_v45  ;;  %v145_v62 = vadd.f32 %v144_v55, %v143_v47  ;;  %v816_v63 = vmul.f32 0.125, %v81_v54  ;;  %v386_v53 = vld [vmem:[#allocation5 + $0x5] sm:$0x1]  ;;  %v861_v54 = vld [vmem:[#allocation2 + $0x30] sm:$0xff] }
  0x47   :  { %v818_v0 = vmul.f32 0.125, %v88_v56  ;;  %v158_v1 = vrot.slane %v157_v57, 1  ;;  %v95_v6 = vadd.f32 %v94_v59, %v93_v51  ;;  %v101_v7 = vrot.slane %v100_v60, 1 }
  0x48   :  { %v152_v3 = vadd.f32 %v151_v58, %v150_v50  ;;  %v163_v9 = vrot.slane %v162_v61, 2  ;;  %v203_v10 = vmul.f32 0.125, %v145_v62  ;;  %v211_v11 = vmul.f32 %v816_v63, %v816_v63  ;;  %v387_v62 = vld [vmem:[#allocation5 + $0x6] sm:$0x1] }
  0x49   :  { %v397_v12 = vmul.f32 0.1, %v816_v63  ;;  %v212_v13 = vmul.f32 %v818_v0, %v818_v0  ;;  %v398_v18 = vmul.f32 0.1, %v818_v0  ;;  %v159_v19 = vadd.f32 %v158_v1, %v157_v57 }
  0x4a   :  { %v204_v17 = vmul.f32 0.125, %v152_v3  ;;  %v826_v20 = vmul.f32 0.125, %v95_v6  ;;  %v219_v21 = vsub.f32 %v203_v10, %v211_v11  ;;  %v102_v23 = vadd.f32 %v101_v7, %v100_v60 }
  0x4b   :  { %v405_v22 = vadd.f32 %v397_v12, %v790_v8  ;;  %v164_v24 = vadd.f32 %v163_v9, %v162_v61  ;;  %v406_v28 = vadd.f32 %v398_v18, %v796_v14  ;;  %v205_v30 = vmul.f32 0.125, %v159_v19 }
  0x4c   :  { %v220_v27 = vsub.f32 %v204_v17, %v212_v13  ;;  %v213_v31 = vmul.f32 %v826_v20, %v826_v20  ;;  %v834_v32 = vmax.f32 %v219_v21, 0.0  ;;  %v399_v33 = vmul.f32 0.1, %v826_v20  ;;  %v876_v13 = vld [vmem:[#allocation2 + $0x38] sm:$0xff] }
  0x4d   :  { %414 = vst.msk [vmem:[#allocation9] sm:$0x1] %vm413_vm1, %v405_v22  ;;  %v165_v34 = vrot.slane %v164_v24, 1  ;;  %v838_v8 = vmul.f32 0.125, %v102_v23  ;;  %415 = vst.msk [vmem:[#allocation9 + $0x1] sm:$0x1] %vm413_vm1, %v406_v28  ;;  %v136_v58 = vmul.f32 %v849_v43, %v849_v43  ;;  %v137_v19 = vmul.f32 %v861_v54, %v861_v54 }
  0x4e   :  { %v840_v35 = vmax.f32 %v220_v27, 0.0  ;;  %v221_v36 = vsub.f32 %v205_v30, %v213_v31  ;;  %v392_v37 = vmul.f32 0.9, %v384_v25  ;;  %v103_v14 = vsel %vm74_vm0, %v829_v26, 0.0 }
  0x4f   :  { %v235_v39 = vadd.f32 1e-05, %v834_v32  ;;  %v407_v40 = vadd.f32 %v399_v33, %v811_v29  ;;  %v166_v41 = vadd.f32 %v165_v34, %v164_v24  ;;  %v214_v42 = vmul.f32 %v838_v8, %v838_v8 }
  0x50   :  { %v236_v44 = vadd.f32 1e-05, %v840_v35  ;;  %v852_v45 = vmax.f32 %v221_v36, 0.0  ;;  %v400_v46 = vmul.f32 0.1, %v838_v8  ;;  %v104_v47 = vrot.slane %v103_v14, 4 }
  0x51   :  { %529 = vrsqrt.f32 %v235_v39  ;;  %416 = vst.msk [vmem:[#allocation9 + $0x2] sm:$0x1] %vm413_vm1, %v407_v40  ;;  %v206_v48 = vmul.f32 0.125, %v166_v41  ;;  %v135_v29 = vmul.f32 %v829_v26, %v829_v26  ;;  %v858_v49 = vmul.f32 0.9, %v385_v38 }
  0x52   :  { %531 = vrsqrt.f32 %v236_v44  ;;  %v237_v50 = vadd.f32 1e-05, %v852_v45  ;;  %v408_v51 = vadd.f32 %v400_v46, %v392_v37  ;;  %v105_v52 = vadd.f32 %v104_v47, %v103_v14 }
  0x53   :  { %v222_v55 = vsub.f32 %v206_v48, %v214_v42  ;;  %v167_v56 = vsel %vm74_vm0, %v135_v29, 0.0  ;;  %v110_v57 = vsel %vm74_vm0, %v849_v43, 0.0  ;;  %v174_v3 = vsel %vm74_vm0, %v136_v58, 0.0 }
  0x54   :  { %533 = vrsqrt.f32 %v237_v50  ;;  %417 = vst.msk [vmem:[#allocation9 + $0x3] sm:$0x1] %vm413_vm1, %v408_v51  ;;  %v106_v59 = vrot.slane %v105_v52, 2  ;;  %v168_v60 = vrot.slane %v167_v56, 4  ;;  %v111_v61 = vrot.slane %v110_v57, 4 }
  0x55   :  { %v869_v1 = vmax.f32 %v222_v55, 0.0  ;;  %v872_v6 = vmul.f32 0.9, %v386_v53  ;;  %v117_v7 = vsel %vm74_vm0, %v861_v54, 0.0  ;;  %v175_v12 = vrot.slane %v174_v3, 4 }
  0x56   :  { %v107_v9 = vadd.f32 %v106_v59, %v105_v52  ;;  %v169_v10 = vadd.f32 %v168_v60, %v167_v56  ;;  %v112_v11 = vadd.f32 %v111_v61, %v110_v57  ;;  %v118_v18 = vrot.slane %v117_v7, 4 }
  0x57   :  { %v238_v17 = vadd.f32 1e-05, %v869_v1  ;;  %v881_v21 = vmul.f32 0.9, %v387_v62  ;;  %v176_v25 = vadd.f32 %v175_v12, %v174_v3  ;;  %v181_v28 = vsel %vm74_vm0, %v137_v19, 0.0 }
  0x58   :  { %v108_v22 = vrot.slane %v107_v9, 1  ;;  %v170_v23 = vrot.slane %v169_v10, 2  ;;  %v113_v24 = vrot.slane %v112_v11, 2  ;;  %v119_v27 = vadd.f32 %v118_v18, %v117_v7  ;;  %v388_v18 = vld [vmem:[#allocation5 + $0x7] sm:$0x1] }
  0x59   :  { %535 = vrsqrt.f32 %v238_v17  ;;  %v124_v30 = vsel %vm74_vm0, %v876_v13, 0.0  ;;  %v177_v36 = vrot.slane %v176_v25, 2  ;;  %v182_v38 = vrot.slane %v181_v28, 4 }
  0x5a   :  { %v109_v31 = vadd.f32 %v108_v22, %v107_v9  ;;  %v171_v33 = vadd.f32 %v170_v23, %v169_v10  ;;  %v114_v34 = vadd.f32 %v113_v24, %v112_v11  ;;  %v120_v14 = vrot.slane %v119_v27, 2 }
  0x5b   :  { %v530_v37 = vpop.eup %529  ;;  %v125_v39 = vrot.slane %v124_v30, 4  ;;  %v138_v40 = vmul.f32 %v876_v13, %v876_v13  ;;  %v178_v47 = vadd.f32 %v177_v36, %v176_v25  ;;  %v183_v29 = vadd.f32 %v182_v38, %v181_v28 }
  0x5c   :  { %v532_v41 = vpop.eup %531  ;;  %v172_v42 = vrot.slane %v171_v33, 1  ;;  %v888_v44 = vmul.f32 0.125, %v109_v31  ;;  %v115_v46 = vrot.slane %v114_v34, 1  ;;  %v121_v48 = vadd.f32 %v120_v14, %v119_v27  ;;  %v908_v31 = vld [vmem:[%s1066_s1] sm:$0x1] }
  0x5d   :  { %v126_v50 = vadd.f32 %v125_v39, %v124_v30  ;;  %v188_v51 = vsel %vm74_vm0, %v138_v40, 0.0  ;;  %v179_v58 = vrot.slane %v178_v47, 1  ;;  %v184_v60 = vrot.slane %v183_v29, 2 }
  0x5e   :  { %v891_v52 = vpop.eup %533  ;;  %v173_v53 = vadd.f32 %v172_v42, %v171_v33  ;;  %v215_v55 = vmul.f32 %v888_v44, %v888_v44  ;;  %v401_v56 = vmul.f32 0.1, %v888_v44  ;;  %v116_v57 = vadd.f32 %v115_v46, %v114_v34 }
  0x5f   :  { %v122_v59 = vrot.slane %v121_v48, 1  ;;  %v127_v61 = vrot.slane %v126_v50, 2  ;;  %v189_v9 = vrot.slane %v188_v51, 4  ;;  %v180_v10 = vadd.f32 %v179_v58, %v178_v47 }
  0x60   :  { %v207_v62 = vmul.f32 0.125, %v173_v53  ;;  %v409_v3 = vadd.f32 %v401_v56, %v858_v49  ;;  %v897_v7 = vmul.f32 0.125, %v116_v57  ;;  %v185_v12 = vadd.f32 %v184_v60, %v183_v29  ;;  %v925_v53 = vld [vmem:[%s1067_s2] sm:$0x1]  ;;  %s487_s2 = sshll.u32 %s692_s20, 4  ;;  %s945_s2 = int_to_ptr.vmem [resolvable:$true] %s487_s2 }
  0x61   :  { %v123_v11 = vadd.f32 %v122_v59, %v121_v48  ;;  %v128_v17 = vadd.f32 %v127_v61, %v126_v50  ;;  %v190_v24 = vadd.f32 %v189_v9, %v188_v51  ;;  %v208_v27 = vmul.f32 0.125, %v180_v10  ;;  %s611_s21 = scalar_lea.vmem %s945_s2, 128  ;;  %p616_p11 = scmp.lt.s32.totalorder %s945_s2, %s945_s2 }
  0x62   :  { %v223_v19 = vsub.f32 %v207_v62, %v215_v55  ;;  %418 = vst.msk [vmem:[#allocation9 + $0x4] sm:$0x1] %vm413_vm1, %v409_v3  ;;  %v216_v22 = vmul.f32 %v897_v7, %v897_v7  ;;  %v402_v23 = vmul.f32 0.1, %v897_v7  ;;  %v186_v49 = vrot.slane %v185_v12, 1  ;;  %p612_p10 = scmp.ne.s32.totalorder %s945_s2, %s611_s21  ;;  %p617_p12 = scmp.lt.s32.totalorder %s611_s21, %s611_s21 }
  0x63   :  { %v536_v25 = vpop.eup %535  ;;  %v903_v28 = vmul.f32 0.125, %v123_v11  ;;  %v129_v30 = vrot.slane %v128_v17, 1  ;;  %v191_v36 = vrot.slane %v190_v24, 2  ;;  %v396_v14 = vmul.f32 0.9, %v388_v18 }
  0x64   :  { %v910_v33 = vmax.f32 %v223_v19, 0.0  ;;  %v410_v34 = vadd.f32 %v402_v23, %v872_v6  ;;  %v224_v38 = vsub.f32 %v208_v27, %v216_v22  ;;  %v187_v39 = vadd.f32 %v186_v49, %v185_v12  ;;  %v422_v11 = vld [vmem:[#allocation7] sm:$0x1]  ;;  %p618_p13 = por %p617_p12, %p616_p11 }
  0x65   :  { %v217_v40 = vmul.f32 %v903_v28, %v903_v28  ;;  %v403_v42 = vmul.f32 0.1, %v903_v28  ;;  %v130_v47 = vadd.f32 %v129_v30, %v128_v17  ;;  %v192_v48 = vadd.f32 %v191_v36, %v190_v24 }
  0x66   :  { %v239_v46 = vadd.f32 1e-05, %v910_v33  ;;  %419 = vst.msk [vmem:[#allocation9 + $0x5] sm:$0x1] %vm413_vm1, %v410_v34  ;;  %v252_v29 = vmul.f32 %v530_v37, %v908_v31  ;;  %v919_v50 = vmax.f32 %v224_v38, 0.0  ;;  %v209_v6 = vmul.f32 0.125, %v187_v39  ;;  %p619_p0 = pnand %p618_p13, %p612_p10 }
  0x67   :  { %v411_v51 = vadd.f32 %v403_v42, %v881_v21  ;;  %v253_v55 = vmul.f32 %v532_v41, %v908_v31  ;;  %v193_v56 = vrot.slane %v192_v48, 1  ;;  %v928_v57 = vmul.f32 0.125, %v130_v47  ;;  %v423_v34 = vld [vmem:[#allocation7 + $0x1] sm:$0x1] }
  0x68   :  { %537 = vrsqrt.f32 %v239_v46  ;;  %v261_v58 = vmul.f32 %v252_v29, %v816_v63  ;;  %v240_v37 = vadd.f32 1e-05, %v919_v50  ;;  %v225_v59 = vsub.f32 %v209_v6, %v217_v40 }
  0x69   :  { %420 = vst.msk [vmem:[#allocation9 + $0x6] sm:$0x1] %vm413_vm1, %v411_v51  ;;  %v280_v21 = vrot.slane %v252_v29, %v784_v5  ;;  %v262_v60 = vmul.f32 %v253_v55, %v818_v0  ;;  %v194_v61 = vadd.f32 %v193_v56, %v192_v48  ;;  %v218_v41 = vmul.f32 %v928_v57, %v928_v57 }
  0x6a   :  { %v404_v62 = vmul.f32 0.1, %v928_v57  ;;  %v269_v3 = vsub.f32 %v925_v53, %v261_v58  ;;  %539 = vrsqrt.f32 %v240_v37  ;;  %v939_v63 = vmax.f32 %v225_v59, 0.0 }
  0x6b   :  { %v309_v9 = vmul.f32 %v280_v21, %v780_v2  ;;  %v270_v10 = vsub.f32 %v925_v53, %v262_v60  ;;  %v210_v12 = vmul.f32 0.125, %v194_v61  ;;  %v284_v18 = vrot.slane %v253_v55, %v784_v5 }
  0x6c   :  { %v412_v0 = vadd.f32 %v404_v62, %v396_v14  ;;  %v328_v17 = vrot.slane %v269_v3, %v784_v5  ;;  %v241_v19 = vadd.f32 1e-05, %v939_v63  ;;  %v254_v2 = vmul.f32 %v891_v52, %v908_v31 }
  0x6d   :  { %v332_v22 = vrot.slane %v270_v10, %v784_v5  ;;  %v255_v23 = vmul.f32 %v536_v25, %v908_v31  ;;  %v226_v24 = vsub.f32 %v210_v12, %v218_v41  ;;  %v310_v49 = vmul.f32 %v284_v18, %v782_v4 }
  0x6e   :  { %421 = vst.msk [vmem:[#allocation9 + $0x7] sm:$0x1] %vm413_vm1, %v412_v0  ;;  %v365_v27 = vadd.f32 %v328_v17, %v309_v9  ;;  %v430_v30 = vmul.f32 0.9, %v422_v11  ;;  %541 = vrsqrt.f32 %v241_v19  ;;  %v263_v36 = vmul.f32 %v254_v2, %v826_v20 }
  0x6f   :  { %v288_v14 = vrot.slane %v254_v2, %v784_v5  ;;  %v264_v38 = vmul.f32 %v255_v23, %v838_v8 }
  0x70   :  { %622 = shalt.err (!%p619_p0)
}
  0x71   :  { %s623_s24 = scalar_lea.hbm %s1071_s6, 128 }
  0x72   :  { %p624_p1 = scmp.ne.s32.totalorder %s1071_s6, %s623_s24  ;;  %p627_p2 = scmp.lt.u32.totalorder %s623_s24, %s1071_s6 }
  0x74   :  { %p629_p3 = pnand %p627_p2, %p624_p1 }
  0x76   :  { %632 = shalt.err (!%p629_p3)
}
  0x77   :  { %493 = dma.vmem_to_hbm [thread:$0]  %s945_s2, 128, %s1071_s6, [#allocation10], %s686_s11, %s686_s11, %s687_s12   ;;  %v977_v4 = vmax.f32 %v226_v24, 0.0  ;;  %373 = vst.msk [vmem:[#allocation8] sm:$0xff] %vm74_vm0, %v365_v27  ;;  %v366_v20 = vadd.f32 %v332_v22, %v310_v49  ;;  %v292_v8 = vrot.slane %v255_v23, %v784_v5  ;;  %v438_v52 = vmul.f32 1.1428572, %v834_v32  ;;  %v538_v47 = vpop.eup %537 }
  0x78   :  { %v424_v25 = vld [vmem:[#allocation7 + $0x2] sm:$0x1]  ;;  %v271_v39 = vsub.f32 %v925_v53, %v263_v36  ;;  %v311_v40 = vmul.f32 %v288_v14, %v798_v15  ;;  %v272_v42 = vsub.f32 %v925_v53, %v264_v38  ;;  %v431_v46 = vmul.f32 0.9, %v423_v34  ;;  %v425_v58 = vld [vmem:[#allocation7 + $0x3] sm:$0x1]  ;;  %v540_v61 = vpop.eup %539 }
  0x79   :  { %v242_v48 = vadd.f32 1e-05, %v977_v4  ;;  %374 = vst.msk [vmem:[#allocation8 + $0x8] sm:$0xff] %vm74_vm0, %v366_v20  ;;  %v312_v29 = vmul.f32 %v292_v8, %v800_v16  ;;  %v446_v6 = vmul.f32 0.1, %v438_v52  ;;  %v256_v56 = vmul.f32 %v538_v47, %v908_v31  ;;  %v542_v24 = vpop.eup %541  ;;  %s693_s6 = smov [#allocation11]  }
  0x7a   :  { %v439_v51 = vmul.f32 1.1428572, %v840_v35  ;;  %v336_v32 = vrot.slane %v271_v39, %v784_v5  ;;  %v340_v55 = vrot.slane %v272_v42, %v784_v5  ;;  %v432_v15 = vmul.f32 0.9, %v424_v25  ;;  %v426_v60 = vld [vmem:[#allocation7 + $0x4] sm:$0x1] }
  0x7b   :  { %543 = vrsqrt.f32 %v242_v48  ;;  %v454_v37 = vadd.f32 %v446_v6, %v430_v30  ;;  %v440_v21 = vmul.f32 1.1428572, %v852_v45  ;;  %v265_v62 = vmul.f32 %v256_v56, %v888_v44  ;;  %v427_v12 = vld [vmem:[#allocation7 + $0x5] sm:$0x1]  ;;  %v428_v23 = vld [vmem:[#allocation7 + $0x6] sm:$0x1] }
  0x7c   :  { %v447_v59 = vmul.f32 0.1, %v439_v51  ;;  %v367_v41 = vadd.f32 %v336_v32, %v311_v40  ;;  %v368_v16 = vadd.f32 %v340_v55, %v312_v29  ;;  %v296_v35 = vrot.slane %v256_v56, %v784_v5  ;;  %v429_v14 = vld [vmem:[#allocation7 + $0x7] sm:$0x1]  ;;  %s499_s9 = sshll.u32 %s693_s6, 4  ;;  %s694_s10 = smov [#allocation8]   ;;  %s500_s9 = int_to_ptr.vmem [resolvable:$true] %s499_s9 }
  0x7d   :  { %v257_v3 = vmul.f32 %v540_v61, %v908_v31  ;;  %462 = vst.msk [vmem:[#allocation11] sm:$0x1] %vm413_vm1, %v454_v37  ;;  %v448_v10 = vmul.f32 0.1, %v440_v21  ;;  %v433_v11 = vmul.f32 0.9, %v425_v58  ;;  %v273_v45 = vsub.f32 %v925_v53, %v265_v62  ;;  %p638_p5 = scmp.lt.s32.totalorder %s500_s9, %s500_s9 }
  0x7e   :  { %v455_v9 = vadd.f32 %v447_v59, %v431_v46  ;;  %375 = vst.msk [vmem:[#allocation8 + $0x10] sm:$0xff] %vm74_vm0, %v367_v41  ;;  %376 = vst.msk [vmem:[#allocation8 + $0x18] sm:$0xff] %vm74_vm0, %v368_v16  ;;  %v313_v0 = vmul.f32 %v296_v35, %v829_v26  ;;  %v441_v44 = vmul.f32 1.1428572, %v869_v1  ;;  %v434_v17 = vmul.f32 0.9, %v426_v60 }
  0x7f   :  { %v266_v18 = vmul.f32 %v257_v3, %v897_v7  ;;  %v300_v19 = vrot.slane %v257_v3, %v784_v5  ;;  %v456_v22 = vadd.f32 %v448_v10, %v432_v15  ;;  %v442_v2 = vmul.f32 1.1428572, %v910_v33  ;;  %s475_s13 = sshll.u32 %s694_s10, 4  ;;  %s633_s14 = scalar_lea.vmem %s500_s9, 128  ;;  %s476_s13 = int_to_ptr.vmem [resolvable:$true] %s475_s13 }
  0x80   :  { %463 = vst.msk [vmem:[#allocation11 + $0x1] sm:$0x1] %vm413_vm1, %v455_v9  ;;  %v344_v27 = vrot.slane %v273_v45, %v784_v5  ;;  %v449_v49 = vmul.f32 0.1, %v441_v44  ;;  %v435_v30 = vmul.f32 0.9, %v427_v12  ;;  %v258_v7 = vmul.f32 %v542_v24, %v908_v31  ;;  %p634_p4 = scmp.ne.s32.totalorder %s500_s9, %s633_s14  ;;  %p639_p6 = scmp.lt.s32.totalorder %s633_s14, %s633_s14 }
  0x81   :  { %v443_v26 = vmul.f32 1.1428572, %v919_v50  ;;  %v274_v1 = vsub.f32 %v925_v53, %v266_v18  ;;  %v314_v34 = vmul.f32 %v300_v19, %v849_v43  ;;  %464 = vst.msk [vmem:[#allocation11 + $0x2] sm:$0x1] %vm413_vm1, %v456_v22  ;;  %v450_v36 = vmul.f32 0.1, %v442_v2 }
  0x82   :  { %v369_v38 = vadd.f32 %v344_v27, %v313_v0  ;;  %v457_v33 = vadd.f32 %v449_v49, %v433_v11  ;;  %v436_v8 = vmul.f32 0.9, %v428_v23  ;;  %v267_v25 = vmul.f32 %v258_v7, %v903_v28  ;;  %p640_p7 = por %p639_p6, %p638_p5 }
  0x83   :  { %v451_v20 = vmul.f32 0.1, %v443_v26  ;;  %v348_v52 = vrot.slane %v274_v1, %v784_v5  ;;  %v304_v50 = vrot.slane %v258_v7, %v784_v5  ;;  %v458_v39 = vadd.f32 %v450_v36, %v434_v17 }
  0x84   :  { %377 = vst.msk [vmem:[#allocation8 + $0x20] sm:$0xff] %vm74_vm0, %v369_v38  ;;  %v444_v40 = vmul.f32 1.1428572, %v939_v63  ;;  %v437_v42 = vmul.f32 0.9, %v429_v14  ;;  %v275_v29 = vsub.f32 %v925_v53, %v267_v25  ;;  %p641_p8 = pnand %p640_p7, %p634_p4 }
  0x85   :  { %465 = vst.msk [vmem:[#allocation11 + $0x3] sm:$0x1] %vm413_vm1, %v457_v33  ;;  %v459_v43 = vadd.f32 %v451_v20, %v435_v30  ;;  %v445_v46 = vmul.f32 1.1428572, %v977_v4  ;;  %v544_v47 = vpop.eup %543  ;;  %v370_v48 = vadd.f32 %v348_v52, %v314_v34  ;;  %v315_v6 = vmul.f32 %v304_v50, %v861_v54  ;;  %466 = vst.msk [vmem:[#allocation11 + $0x4] sm:$0x1] %vm413_vm1, %v458_v39 }
  0x86   :  { %v259_v28 = vmul.f32 %v544_v47, %v908_v31  ;;  %v452_v51 = vmul.f32 0.1, %v444_v40  ;;  %v352_v63 = vrot.slane %v275_v29, %v784_v5 }
  0x87   :  { %467 = vst.msk [vmem:[#allocation11 + $0x5] sm:$0x1] %vm413_vm1, %v459_v43  ;;  %v453_v32 = vmul.f32 0.1, %v445_v46 }
  0x88   :  { %378 = vst.msk [vmem:[#allocation8 + $0x28] sm:$0xff] %vm74_vm0, %v370_v48  ;;  %v268_v4 = vmul.f32 %v259_v28, %v928_v57  ;;  %v308_v55 = vrot.slane %v259_v28, %v784_v5  ;;  %v460_v56 = vadd.f32 %v452_v51, %v436_v8  ;;  %v371_v15 = vadd.f32 %v352_v63, %v315_v6 }
  0x89   :  { %v461_v54 = vadd.f32 %v453_v32, %v437_v42 }
  0x8a   :  { %v276_v58 = vsub.f32 %v925_v53, %v268_v4  ;;  %v316_v31 = vmul.f32 %v308_v55, %v876_v13  ;;  %468 = vst.msk [vmem:[#allocation11 + $0x6] sm:$0x1] %vm413_vm1, %v460_v56 }
  0x8b   :  { %469 = vst.msk [vmem:[#allocation11 + $0x7] sm:$0x1] %vm413_vm1, %v461_v54 }
  0x8c   :  { %379 = vst.msk [vmem:[#allocation8 + $0x30] sm:$0xff] %vm74_vm0, %v371_v15 }
  0x8d   :  { %644 = shalt.err (!%p641_p8)
}
  0x8e   :  { %s645_s0 = scalar_lea.hbm %s1072_s7, 128 }
  0x8f   :  { %p646_p9 = scmp.ne.s32.totalorder %s1072_s7, %s645_s0  ;;  %p649_p10 = scmp.lt.u32.totalorder %s645_s0, %s1072_s7 }
  0x91   :  { %p651_p11 = pnand %p649_p10, %p646_p9 }
  0x93   :  { %654 = shalt.err (!%p651_p11)
}
  0x94   :  { %505 = dma.vmem_to_hbm [thread:$0]  %s500_s9, 128, %s1072_s7, [#allocation10], %s686_s11, %s686_s11, %s687_s12   ;;  %v356_v13 = vrot.slane %v276_v58, %v784_v5 }
  0x95   :  { %s655_s2 = scalar_lea.vmem %s476_s13, 1024  ;;  %p660_p13 = scmp.lt.s32.totalorder %s476_s13, %s476_s13 }
  0x96   :  { %v372_v53 = vadd.f32 %v356_v13, %v316_v31  ;;  %p656_p12 = scmp.ne.s32.totalorder %s476_s13, %s655_s2  ;;  %p661_p0 = scmp.lt.s32.totalorder %s655_s2, %s655_s2 }
  0x98   :  { %380 = vst.msk [vmem:[#allocation8 + $0x38] sm:$0xff] %vm74_vm0, %v372_v53  ;;  %p662_p1 = por %p661_p0, %p660_p13 }
  0x9a   :  { %p663_p2 = pnand %p662_p1, %p656_p12 }
  0x9c   :  { %666 = shalt.err (!%p663_p2)
}
  0x9d   :  { %s667_s23 = scalar_lea.hbm %s1070_s5, 1024 }
  0x9e   :  { %p668_p3 = scmp.ne.s32.totalorder %s1070_s5, %s667_s23  ;;  %p671_p4 = scmp.lt.u32.totalorder %s667_s23, %s1070_s5 }
  0xa0   :  { %p673_p5 = pnand %p671_p4, %p668_p3 }
  0xa2   :  { %676 = shalt.err (!%p673_p5)
}
  0xa3   :  { %481 = dma.vmem_to_hbm [thread:$0]  %s476_s13, 1024, %s1070_s5, [#allocation4], %s689_s3, %s689_s3, %s690_s25  }
  0xa4   :  { %681 = dma.done.wait [#allocation4], 1024  }
  0xa5   :  { %682 = vsyncadd [#allocation4], 4294966272 }
  0xa6   :  { %683 = dma.done.wait [#allocation10], 256  }
  0xa7   :  { %684 = vsyncadd [#allocation10], 4294967040 }
  0xa8   :  { %515 = vsyncpa [#allocation3], 1 }
  0xa9   :  { %516 = vsyncpa [#allocation6], 1 }
  0xaa   :  { %517 = vsyncpa [#allocation4], 1 }
  0xab   :  { %518 = vsyncpa [#allocation10], 1 }

</bundles_post_ra>
